<compile_context>
chip_gen: v6e
topology: v6e:2x2x1
jax: 0.10.0
libtpu: 0.0.40
codegen_flags: <defaults>
</compile_context>

<pallas_src>
import math

import jax
import jax.numpy as jnp
from jax.experimental import pallas as pl
from jax.experimental.pallas import tpu as pltpu


def _round_up(x, m):
    return ((x + m - 1) // m) * m


def _tpu_vmem_bytes():
    """Physical VMEM per TensorCore, with a conservative (v7x) fallback."""
    try:
        info = pltpu.get_tpu_info()
        v = getattr(info, "vmem_capacity_bytes", None)
        if v:
            return int(v)
    except Exception:
        pass
    return 64 << 20


# ---------------------------------------------------------------------------
# Kernels
# ---------------------------------------------------------------------------
def _noisy_linear_train_kernel(x_ref, wmu_ref, wsigeps_ref, eout_ref, b_ref,
                               o_ref, w_scratch):
    # Batch is the innermost grid axis (axis 1): rebuild the noisy weight tile
    # only on the first batch tile of each out tile, then reuse the VMEM copy.
    @pl.when(pl.program_id(1) == 0)
    def _():
        # W[K, tn] = mu + (sigma * eps_in)[K, tn] * eps_out[1, tn]
        # (eps_in was folded into sigma outside the kernel at reset_noise time,
        #  so the full [out, in] epsilon matrix never touches HBM.)
        w_scratch[...] = wmu_ref[...] + wsigeps_ref[...] * eout_ref[...]

    # lhs[M,K] x rhs[K,N]: contracting dim is not the rhs lane dim -> no XLU
    # transpose; f32 accumulation on the MXU.
    y = jax.lax.dot_general(
        x_ref[...], w_scratch[...],
        dimension_numbers=(((1,), (0,)), ((), ())),
        preferred_element_type=jnp.float32,
    )
    o_ref[...] = (y + b_ref[...]).astype(o_ref.dtype)


def _noisy_linear_eval_kernel(x_ref, wmu_ref, b_ref, o_ref):
    y = jax.lax.dot_general(
        x_ref[...], wmu_ref[...],
        dimension_numbers=(((1,), (0,)), ((), ())),
        preferred_element_type=jnp.float32,
    )
    o_ref[...] = (y + b_ref[...]).astype(o_ref.dtype)


# ---------------------------------------------------------------------------
# Wrapper
# ---------------------------------------------------------------------------
def noisy_linear(x, weight_mu_t, weight_sigma_eps_t, eps_out,
                 bias_mu, bias_sigma, bias_epsilon, *,
                 training=True, matmul_dtype=None, tm=None, tn=None):
    """NoisyLinear forward.

    x:                  [B, in_f]
    weight_mu_t:        [in_f, out_f]  (transposed vs. PyTorch's [out, in])
    weight_sigma_eps_t: [in_f, out_f]  == weight_sigma_t * eps_in[:, None]
                        (precomputed once per reset_noise, outside the hot path)
    eps_out:            [out_f]        (weight_epsilon = outer(eps_out, eps_in))
    bias_mu/sigma/epsilon: [out_f]
    """
    out_dtype = x.dtype
    B, in_f = x.shape
    in_f_w, out_f = weight_mu_t.shape
    assert in_f_w == in_f

    # Collapse the three bias vectors into one f32 row outside the kernel.
    if training:
        bias = (bias_mu + bias_sigma * bias_epsilon).astype(jnp.float32)
    else:
        bias = bias_mu.astype(jnp.float32)

    # Cast MXU operands ONCE in the wrapper so they are streamed from HBM in
    # the narrow dtype (bf16 halves the dominant weight traffic).  Note: on
    # v5e the bf16 W-construction is emulated on the VPU but the kernel stays
    # HBM-bound, so this is still the right trade; keep matmul_dtype=None for
    # a pure f32 path if NoisyNet exploration fidelity matters.
    if matmul_dtype is not None:
        x = x.astype(matmul_dtype)
        weight_mu_t = weight_mu_t.astype(matmul_dtype)
        if training:
            weight_sigma_eps_t = weight_sigma_eps_t.astype(matmul_dtype)
            eps_out = eps_out.astype(matmul_dtype)
    w_dtype = weight_mu_t.dtype

    # --- generation-aware tile sizes / VMEM budget --------------------------
    vmem_phys = _tpu_vmem_bytes()
    big_vmem = vmem_phys >= (96 << 20)          # v5e / v6e 128 MiB parts

    if tn is None:
        tn = 512 if (big_vmem and out_f >= 512) else 256
    tn = _round_up(min(tn, _round_up(out_f, 128)), 128)
    if tm is None:
        tm = 256 if (big_vmem and B >= 256) else 128
    tm = _round_up(min(tm, _round_up(B, 8)), 8)

    B_pad = _round_up(B, tm)
    out_pad = _round_up(out_f, tn)

    # --- pad to tile boundaries (sliced off before returning) ---------------
    if B_pad != B:
        x = jnp.pad(x, ((0, B_pad - B), (0, 0)))
    if out_pad != out_f:
        pad_o = out_pad - out_f
        weight_mu_t = jnp.pad(weight_mu_t, ((0, 0), (0, pad_o)))
        bias = jnp.pad(bias, ((0, pad_o),))
        if training:
            weight_sigma_eps_t = jnp.pad(weight_sigma_eps_t, ((0, 0), (0, pad_o)))
            eps_out = jnp.pad(eps_out, ((0, pad_o),))

    bias_row = bias.reshape(1, out_pad)

    gi = B_pad // tm            # batch tiles
    gj = out_pad // tn          # out tiles
    # Batch innermost -> weight block index constant across the inner loop, so
    # each weight tile is DMA'd from HBM exactly once.
    grid = (gj, gi)

    x_spec = pl.BlockSpec((tm, in_f), lambda j, i: (i, 0))
    w_spec = pl.BlockSpec((in_f, tn), lambda j, i: (0, j))
    row_spec = pl.BlockSpec((1, tn), lambda j, i: (0, j))
    out_spec = pl.BlockSpec((tm, tn), lambda j, i: (i, j))

    x_b = jnp.dtype(x.dtype).itemsize
    w_b = jnp.dtype(w_dtype).itemsize
    o_b = jnp.dtype(out_dtype).itemsize

    if training:
        kernel = _noisy_linear_train_kernel
        in_specs = [x_spec, w_spec, w_spec, row_spec, row_spec]
        args = (x, weight_mu_t, weight_sigma_eps_t,
                eps_out.reshape(1, out_pad), bias_row)
        scratch = (pltpu.VMEM((in_f, tn), w_dtype),)   # cached noisy W tile
        n_w = 2
        # The scratch rebuild is gated on the batch axis -> it must not be
        # split across cores; mark it "arbitrary".
        dim_sem = ("parallel", "arbitrary")
    else:
        # Eval: sigma/eps never passed -> never DMA'd.
        kernel = _noisy_linear_eval_kernel
        in_specs = [x_spec, w_spec, row_spec]
        args = (x, weight_mu_t, bias_row)
        scratch = ()
        n_w = 1
        dim_sem = ("parallel", "parallel")

    # VMEM estimate: double-buffered tiles + persistent W scratch + slack for
    # in-kernel temporaries; scoped limit leaves >=16 MiB headroom (v7x-safe).
    vmem_est = (2 * (tm * in_f * x_b + n_w * in_f * tn * w_b
                     + 2 * tn * 4 + tm * tn * o_b)
                + in_f * tn * w_b            # persistent W scratch
                + tm * tn * 4)               # f32 matmul result temporary
    vmem_cap = min(max(vmem_phys - (16 << 20), 32 << 20), 100 << 20)
    vmem_limit = int(min(max(2 * vmem_est, 32 << 20), vmem_cap))

    bytes_accessed = (gj * B_pad * in_f * x_b          # x re-read per out tile
                      + n_w * in_f * out_pad * w_b     # weights streamed once
                      + out_pad * (w_b + 4)            # eps_out row + bias row
                      + B_pad * out_pad * o_b)
    cost = pl.CostEstimate(flops=2 * B_pad * in_f * out_pad,
                           transcendentals=0,
                           bytes_accessed=int(bytes_accessed))

    y = pl.pallas_call(
        kernel,
        out_shape=jax.ShapeDtypeStruct((B_pad, out_pad), out_dtype),
        grid=grid,
        in_specs=in_specs,
        out_specs=out_spec,
        scratch_shapes=scratch,
        compiler_params=pltpu.CompilerParams(
            dimension_semantics=dim_sem,
            vmem_limit_bytes=vmem_limit),
        cost_estimate=cost,
    )(*args)

    return y[:B, :out_f]


# ---------------------------------------------------------------------------
# Deterministic parameter / noise init (mirrors NoisyLinear.__init__ /
# reset_parameters / reset_noise; weights stored transposed, epsilon factored,
# eps_in pre-folded into sigma).
# ---------------------------------------------------------------------------
def _scale_noise(key, size):
    v = jax.random.normal(key, (size,), dtype=jnp.float32)
    return jnp.sign(v) * jnp.sqrt(jnp.abs(v))


def init_noisy_linear(key, in_features, out_features, std_init=0.5):
    k_wmu, k_bmu, k_ein, k_eout = jax.random.split(key, 4)
    mu_range = 1.0 / math.sqrt(in_features)

    weight_mu_t = jax.random.uniform(
        k_wmu, (in_features, out_features), jnp.float32, -mu_range, mu_range)
    weight_sigma_t = jnp.full((in_features, out_features),
                              std_init / math.sqrt(in_features), jnp.float32)
    bias_mu = jax.random.uniform(
        k_bmu, (out_features,), jnp.float32, -mu_range, mu_range)
    bias_sigma = jnp.full((out_features,),
                          std_init / math.sqrt(out_features), jnp.float32)

    eps_in = _scale_noise(k_ein, in_features)
    eps_out = _scale_noise(k_eout, out_features)
    # weight_epsilon = outer(eps_out, eps_in) (PyTorch [out, in] layout); kept
    # factored.  Fold eps_in into sigma once per reset_noise -> the kernel only
    # needs (sigma*eps_in) and the eps_out row.
    weight_sigma_eps_t = weight_sigma_t * eps_in[:, None]
    return dict(weight_mu_t=weight_mu_t,
                weight_sigma_t=weight_sigma_t,
                weight_sigma_eps_t=weight_sigma_eps_t,
                eps_in=eps_in, eps_out=eps_out,
                bias_mu=bias_mu, bias_sigma=bias_sigma, bias_epsilon=eps_out)


if __name__ == "__main__":
    key = jax.random.PRNGKey(0)
    k_p1, k_x1, k_p2, k_x2, k_p3, k_x3 = jax.random.split(key, 6)

    # --- Case 1: lane-aligned shapes, f32 path ------------------------------
    in_f, out_f, batch = 128, 512, 16
    p = init_noisy_linear(k_p1, in_f, out_f, std_init=0.5)
    x = jax.random.normal(k_x1, (batch, in_f), dtype=jnp.float32)

    y = jax.block_until_ready(noisy_linear(
        x, p["weight_mu_t"], p["weight_sigma_eps_t"], p["eps_out"],
        p["bias_mu"], p["bias_sigma"], p["bias_epsilon"], training=True))

    w_ref = p["weight_mu_t"] + p["weight_sigma_t"] * jnp.outer(p["eps_in"], p["eps_out"])
    b_ref = p["bias_mu"] + p["bias_sigma"] * p["bias_epsilon"]
    y_ref = x @ w_ref + b_ref
    assert y.shape == (batch, out_f)
    assert jnp.allclose(y, y_ref, atol=1e-4, rtol=1e-4)

    # Eval mode: sigma / epsilon never DMA'd.
    y_eval = jax.block_until_ready(noisy_linear(
        x, p["weight_mu_t"], p["weight_sigma_eps_t"], p["eps_out"],
        p["bias_mu"], p["bias_sigma"], p["bias_epsilon"], training=False))
    assert jnp.allclose(y_eval, x @ p["weight_mu_t"] + p["bias_mu"],
                        atol=1e-4, rtol=1e-4)

    # --- Case 2: unaligned shapes (padding path) + bf16 streamed operands ---
    in_f2, out_f2, batch2 = 32, 64, 8
    p2 = init_noisy_linear(k_p2, in_f2, out_f2, std_init=0.5)
    x2 = jax.random.normal(k_x2, (batch2, in_f2), dtype=jnp.float32)

    y2 = jax.block_until_ready(noisy_linear(
        x2, p2["weight_mu_t"], p2["weight_sigma_eps_t"], p2["eps_out"],
        p2["bias_mu"], p2["bias_sigma"], p2["bias_epsilon"],
        training=True, matmul_dtype=jnp.bfloat16))

    w2_ref = p2["weight_mu_t"] + p2["weight_sigma_t"] * jnp.outer(p2["eps_in"], p2["eps_out"])
    b2_ref = p2["bias_mu"] + p2["bias_sigma"] * p2["bias_epsilon"]
    y2_ref = x2 @ w2_ref + b2_ref
    assert y2.shape == (batch2, out_f2)
    assert jnp.allclose(y2, y2_ref, atol=5e-2, rtol=5e-2)  # bf16 tolerance

    # --- Case 3: multi-tile grid on both axes -> exercises the per-out-tile
    # W caching (rebuilt only at batch-tile 0) and the weight DMA-skip reuse.
    in_f3, out_f3, batch3 = 64, 256, 48
    p3 = init_noisy_linear(k_p3, in_f3, out_f3, std_init=0.5)
    x3 = jax.random.normal(k_x3, (batch3, in_f3), dtype=jnp.float32)

    y3 = jax.block_until_ready(noisy_linear(
        x3, p3["weight_mu_t"], p3["weight_sigma_eps_t"], p3["eps_out"],
        p3["bias_mu"], p3["bias_sigma"], p3["bias_epsilon"],
        training=True, tm=16, tn=128))

    w3_ref = p3["weight_mu_t"] + p3["weight_sigma_t"] * jnp.outer(p3["eps_in"], p3["eps_out"])
    b3_ref = p3["bias_mu"] + p3["bias_sigma"] * p3["bias_epsilon"]
    y3_ref = x3 @ w3_ref + b3_ref
    assert y3.shape == (batch3, out_f3)
    assert jnp.allclose(y3, y3_ref, atol=1e-4, rtol=1e-4)

    print("KERNEL_OK")
</pallas_src>

<mosaic_0001>
module attributes {stable_mosaic.version = 11 : i64} {
  func.func @_noisy_linear_train_kernel(%arg0: i32, %arg1: i32, %arg2: memref<16x128xf32, #tpu.memory_space<vmem>>, %arg3: memref<128x256xf32, #tpu.memory_space<vmem>>, %arg4: memref<128x256xf32, #tpu.memory_space<vmem>>, %arg5: memref<1x256xf32, #tpu.memory_space<vmem>>, %arg6: memref<1x256xf32, #tpu.memory_space<vmem>>, %arg7: memref<16x256xf32, #tpu.memory_space<vmem>>, %arg8: memref<128x256xf32, #tpu.memory_space<vmem>>) attributes {dimension_semantics = [#tpu.dimension_semantics<parallel>, #tpu.dimension_semantics<arbitrary>], iteration_bounds = array<i64: 2, 1>, scalar_prefetch = 0 : i64, scratch_operands = 1 : i64, tpu.core_type = #tpu.core_type<tc>, window_params = [{transform_indices = @transform_0, window_bounds = array<i64: 16, 128>}, {transform_indices = @transform_1, window_bounds = array<i64: 128, 256>}, {transform_indices = @transform_2, window_bounds = array<i64: 128, 256>}, {transform_indices = @transform_3, window_bounds = array<i64: 1, 256>}, {transform_indices = @transform_4, window_bounds = array<i64: 1, 256>}, {transform_indices = @transform_5, window_bounds = array<i64: 16, 256>}]} {
    %c0_i32 = arith.constant 0 : i32
    %0 = arith.cmpi eq, %arg1, %c0_i32 : i32
    %1 = arith.extui %0 : i1 to i32
    %c0_i32_0 = arith.constant 0 : i32
    %2 = arith.cmpi ne, %1, %c0_i32_0 : i32
    scf.if %2 {
      %c0_8 = arith.constant 0 : index
      %c0_9 = arith.constant 0 : index
      %10 = vector.load %arg3[%c0_8, %c0_9] : memref<128x256xf32, #tpu.memory_space<vmem>>, vector<128x256xf32>
      %c0_10 = arith.constant 0 : index
      %c0_11 = arith.constant 0 : index
      %11 = vector.load %arg4[%c0_10, %c0_11] : memref<128x256xf32, #tpu.memory_space<vmem>>, vector<128x256xf32>
      %c0_12 = arith.constant 0 : index
      %c0_13 = arith.constant 0 : index
      %12 = vector.load %arg5[%c0_12, %c0_13] : memref<1x256xf32, #tpu.memory_space<vmem>>, vector<1x256xf32>
      %13 = vector.broadcast %12 : vector<1x256xf32> to vector<128x256xf32>
      %14 = arith.mulf %11, %13 : vector<128x256xf32>
      %15 = arith.addf %10, %14 : vector<128x256xf32>
      %c0_14 = arith.constant 0 : index
      %c0_15 = arith.constant 0 : index
      %16 = vector.load %arg8[%c0_14, %c0_15] : memref<128x256xf32, #tpu.memory_space<vmem>>, vector<128x256xf32>
      tpu.vector_store %arg8[%c0_14, %c0_15], %15 {strides = array<i32>} : memref<128x256xf32, #tpu.memory_space<vmem>>, vector<128x256xf32>,
    } else {
    }
    %c0 = arith.constant 0 : index
    %c0_1 = arith.constant 0 : index
    %3 = vector.load %arg2[%c0, %c0_1] : memref<16x128xf32, #tpu.memory_space<vmem>>, vector<16x128xf32>
    %c0_2 = arith.constant 0 : index
    %c0_3 = arith.constant 0 : index
    %4 = vector.load %arg8[%c0_2, %c0_3] : memref<128x256xf32, #tpu.memory_space<vmem>>, vector<128x256xf32>
    %cst = arith.constant dense<0.000000e+00> : vector<16x256xf32>
    %5 = tpu.matmul %3, %4, %cst {dimension_numbers = #tpu.dot_dimension_numbers<[1], [0], [0], [1], [0, 0, 1, 1], [], []>} : vector<16x128xf32>, vector<128x256xf32>, vector<16x256xf32> -> vector<16x256xf32>
    %c0_4 = arith.constant 0 : index
    %c0_5 = arith.constant 0 : index
    %6 = vector.load %arg6[%c0_4, %c0_5] : memref<1x256xf32, #tpu.memory_space<vmem>>, vector<1x256xf32>
    %7 = vector.broadcast %6 : vector<1x256xf32> to vector<16x256xf32>
    %8 = arith.addf %5, %7 : vector<16x256xf32>
    %c0_6 = arith.constant 0 : index
    %c0_7 = arith.constant 0 : index
    %9 = vector.load %arg7[%c0_6, %c0_7] : memref<16x256xf32, #tpu.memory_space<vmem>>, vector<16x256xf32>
    tpu.vector_store %arg7[%c0_6, %c0_7], %8 {strides = array<i32>} : memref<16x256xf32, #tpu.memory_space<vmem>>, vector<16x256xf32>,
    return
  }
  func.func @transform_0(%arg0: i32, %arg1: i32) -> (i32, i32) {
    %c0_i32 = arith.constant 0 : i32
    %c0_i32_0 = arith.constant 0 : i32
    return %arg1, %c0_i32 : i32, i32
  }
  func.func @transform_1(%arg0: i32, %arg1: i32) -> (i32, i32) {
    %c0_i32 = arith.constant 0 : i32
    %c0_i32_0 = arith.constant 0 : i32
    return %c0_i32, %arg0 : i32, i32
  }
  func.func @transform_2(%arg0: i32, %arg1: i32) -> (i32, i32) {
    %c0_i32 = arith.constant 0 : i32
    %c0_i32_0 = arith.constant 0 : i32
    return %c0_i32, %arg0 : i32, i32
  }
  func.func @transform_3(%arg0: i32, %arg1: i32) -> (i32, i32) {
    %c0_i32 = arith.constant 0 : i32
    %c0_i32_0 = arith.constant 0 : i32
    return %c0_i32, %arg0 : i32, i32
  }
  func.func @transform_4(%arg0: i32, %arg1: i32) -> (i32, i32) {
    %c0_i32 = arith.constant 0 : i32
    %c0_i32_0 = arith.constant 0 : i32
    return %c0_i32, %arg0 : i32, i32
  }
  func.func @transform_5(%arg0: i32, %arg1: i32) -> (i32, i32) {
    %c0_i32 = arith.constant 0 : i32
    return %arg1, %arg0 : i32, i32
  }
}

</mosaic_0001>

<bundles_post_ra>
// kernel: tpu_custom_call.1
= control target key start
LH: loop header
LB: loop body
LE: loop exit
PB: predicated region body
PF: predicated region fallthrough
CT: control target
= control target key end

     0   :  { %s1619_s0 = inlined_call_operand.hbm [shape: f32[16,128], index: 0, kind: input, shape index: {}]   ;;  %s1620_s1 = inlined_call_operand.hbm [shape: f32[128,512], index: 1, kind: input, shape index: {}]   ;;  %s1621_s2 = inlined_call_operand.hbm [shape: f32[128,512], index: 2, kind: input, shape index: {}]   ;;  %s1622_s3 = inlined_call_operand.vmem [shape: f32[1,512], index: 3, kind: input, shape index: {}]   ;;  %s1623_s4 = inlined_call_operand.hbm [shape: f32[1,512], index: 4, kind: input, shape index: {}]   ;;  %s1624_s5 = inlined_call_operand.hbm [shape: f32[16,512], index: 5, kind: output, shape index: {}]  }
   0x1   :  { %1630 = sst [smem:[#allocation18_spill]] %s1620_s1 }
   0x2   :  { %1631 = sst [smem:[#allocation19_spill]] %s1621_s2 }
   0x3   :  { %1632 = sst [smem:[#allocation20_spill]] %s1623_s4 }
   0x4   :  { %10 = vsyncpa [#allocation4], 0 }
   0x5   :  { %11 = vsyncpa [#allocation7], 0 }
   0x6   :  { %13 = vsyncpa [#allocation7 + $0x1], 0 }
   0x7   :  { %14 = vsyncpa [#allocation10], 0 }
   0x8   :  { %16 = vsyncpa [#allocation10 + $0x1], 0 }
   0x9   :  { %17 = vsyncpa [#allocation5], 0 }
   0xa   :  { %19 = vsyncpa [#allocation5 + $0x1], 0  ;;  %s1248_s18 = smov 0   ;;  %s1250_s19 = smov 0  }
   0xb   :  { %s1252_s20 = smov 0   ;;  %s1254_s21 = smov 0  }
   0xc   :  { %s1256_s22 = smov 0   ;;  %s1258_s23 = smov 0  }
   0xd LB: > { %s37_s24 = sadd.s32 1, %s1198_s22  ;;  %s70_s25 = sadd.s32 1, %s1190_s20  ;;  %s1202_s23 = sphi %s1258_s23, %s25_s23   ;;  %s1198_s22 = sphi %s1256_s22, %s1657_s22   ;;  %s1194_s21 = sphi %s1254_s21, %s1656_s21   ;;  %s1190_s20 = sphi %s1252_s20, %s1655_s20   ;;  %s1186_s19 = sphi %s1250_s19, %s1654_s19   ;;  %s1182_s18 = sphi %s1248_s18, %s1653_s18  }
   0xe   : > { %p39_p0 = scmp.ge.s32.totalorder %s37_s24, 2  ;;  %p77_p1 = scmp.ne.s32.totalorder %s1190_s20, %s1186_s19 }
   0xf   : > { %p78_p2 = scmp.eq.s32.totalorder %s1202_s23, 0  ;;  %p943_p5 = scmp.lt.s32.totalorder %s1202_s23, 2 }
  0x10   : > { %s1659_s24 = smov (%p39_p0, %s37_s24), 0  ;;  %s229_s27 = sand.u32 1, %s1202_s23  }
  0x11   : > { %1633 = sst [smem:[#allocation16_spill]] %s1659_s24  ;;  %p79_p4 = por %p78_p2, %p77_p1 }
  0x12   : > { %s67_s26 = ssub.s32 %s1198_s22, %s1659_s24  ;;  %s1294_s28 = sand.u32 1, %s1190_s20  }
  0x13   : > { %p68_p6 = scmp.eq.s32.totalorder %s67_s26, 0  ;;  %s876_s29 = sshll.u32 %s1198_s22, 8 }
  0x14   : > { %s855_s6 = sshll.u32 %s1294_s28, 8  ;;  %s1635_s1 = sld [smem:[#allocation18_spill]] }
  0x15   : > { %s1298_s30 = scalar_select %p68_p6, %s1190_s20, %s70_s25  }
  0x16   : > { %p1306_p7 = pnand %p943_p5, %p79_p4  ;;  %s233_s11 = scalar_lea.vmem [#allocation6], %s855_s6 }
  0x17   : > { %1634 = sst [smem:[#allocation17_spill]] %s1298_s30  ;;  %s240_s12 = sshll.u32 %s233_s11, 4  ;;  %s241_s12 = int_to_ptr.vmem [resolvable:$true] %s240_s12 }
  0x18   : > { %s1312_s13 = scalar_lea.sflag [#allocation7], %s229_s27  ;;  %p1629_p8 = pneg %p1306_p7 }
  0x19   : > { %s1017_s14 = scalar_lea.vmem %s241_s12, 4096  ;;  %s1204_s15 = smov [#allocation6]  }
  0x1a   : > { %s239_s9 = scalar_lea.hbm %s1635_s1, %s876_s29  ;;  %p1018_p9 = scmp.ne.s32.totalorder %s241_s12, %s1017_s14 }
  0x1b   : > { %s1022_s16 = sshll.u32 %s1204_s15, 4  ;;  %s1023_s16 = int_to_ptr.vmem [resolvable:$false] %s1022_s16 }
  0x1c   : > { %p1020_p10 = pnand %p1018_p9, %p1629_p8  ;;  %s1024_s17 = scalar_lea.vmem %s1023_s16, 8192 }
  0x1d   : > { %p1025_p12 = scmp.lt.s32.totalorder %s241_s12, %s1023_s16  ;;  %p1026_p13 = scmp.lt.s32.totalorder %s1024_s17, %s1017_s14 }
  0x1e   : > { %p1021_p11 = pneg %p1020_p10 }
  0x1f   : > { %p1027_p0 = por %p1026_p13, %p1025_p12 }
  0x21   : > { %p1028_p2 = pnand %p1027_p0, %p1021_p11 }
  0x23   : > { %1031 = shalt.err (!%p1028_p2)
}
  0x24   : > { %s1625_s25 = smov 512   ;;  %s1626_s26 = smov 256  }
  0x25   : > { %s1207_s27 = smov 16   ;;  %s1637_s2 = sld [smem:[#allocation19_spill]] }
  0x26   : > { %931 = dma.hbm_to_vmem [thread:$0]  (!%p1306_p7), %s239_s9, 4096, %s241_s12, %s1312_s13, %s1625_s25, %s1626_s26, %s1207_s27  }
  0x27   : > { %s254_s14 = scalar_lea.vmem [#allocation8], %s855_s6  ;;  %s1337_s16 = sadd.s32 4294967295, %s1202_s23  }
  0x28   : > { %s261_s15 = sshll.u32 %s254_s14, 4  ;;  %s851_s17 = sadd.s32 4294967294, %s1202_s23   ;;  %s1334_s15 = int_to_ptr.vmem [resolvable:$true] %s261_s15 }
  0x29   : > { %p83_p4 = scmp.ne.s32.totalorder %s1186_s19, %s1182_s18  ;;  %p1627_p5 = scmp.eq.s32.totalorder %s1337_s16, 0 }
  0x2a   : > { %p187_p6 = scmp.eq.s32.totalorder %s1337_s16, 1  ;;  %p193_p9 = scmp.eq.s32.totalorder %s851_s17, 1 }
  0x2b   : > { %s1330_s11 = scalar_lea.hbm %s1637_s2, %s876_s29  ;;  %p1346_p10 = por %p1627_p5, %p83_p4 }
  0x2c   : > { %p852_p11 = scmp.ge.s32.totalorder %s1202_s23, 1  ;;  %p1354_p12 = por %p187_p6, %p77_p1 }
  0x2d   : > { %p1358_p13 = por %p193_p9, %p83_p4  ;;  %p200_p0 = scmp.lt.s32.totalorder %s1202_s23, 3 }
  0x2e   : > { %s1208_s7 = smov [#allocation3]   ;;  %s1045_s14 = scalar_lea.vmem %s1334_s15, 4096 }
  0x2f   : > { %p1363_p2 = pnand %p852_p11, %p200_p0  ;;  %s215_s8 = sshll.u32 %s1208_s7, 4  ;;  %s1367_s8 = int_to_ptr.vmem [resolvable:$true] %s215_s8 }
  0x30   : > { %p1046_p6 = scmp.ne.s32.totalorder %s1334_s15, %s1045_s14  ;;  %s1209_s17 = smov [#allocation8]  }
  0x31   : > { %p924_p1 = pneg %p1363_p2  ;;  %s1050_s25 = sshll.u32 %s1209_s17, 4  ;;  %s1051_s25 = int_to_ptr.vmem [resolvable:$false] %s1050_s25 }
  0x32   : > { %p1048_p4 = pnand %p1046_p6, %p1629_p8  ;;  %s1052_s26 = scalar_lea.vmem %s1051_s25, 8192 }
  0x33   : > { %p1053_p11 = scmp.lt.s32.totalorder %s1334_s15, %s1051_s25  ;;  %p1054_p0 = scmp.lt.s32.totalorder %s1052_s26, %s1045_s14 }
  0x34   : > { %p1049_p9 = pneg %p1048_p4 }
  0x35   : > { %p1055_p3 = por %p1054_p0, %p1053_p11 }
  0x37   : > { %p1056_p5 = pnand %p1055_p3, %p1049_p9 }
  0x39   : > { %1059 = shalt.err (!%p1056_p5)
}
  0x3a   : > { %s1642_s7 = smov 256   ;;  %s1643_s1 = smov 512  }
  0x3b   : > { %934 = dma.hbm_to_vmem [thread:$0]  (!%p1306_p7), %s1330_s11, 4096, %s1334_s15, %s1312_s13, %s1643_s1, %s1642_s7, %s1207_s27  }
  0x3c   : > { %p1644_p6 = scmp.eq.s32.totalorder %s1337_s16, 0  ;;  %s861_s26 = sshll.u32 %s1294_s28, 1 }
  0x3d   : > { %s878_s14 = sshll.u32 %s1198_s22, 5  ;;  %s1646_s4 = sld [smem:[#allocation20_spill]] }
  0x3e   : > { %p1390_p3 = pnand %p924_p1, %p1644_p6  ;;  %s1071_s30 = scalar_lea.vmem %s1367_s8, 256 }
  0x3f   : > { %p1072_p4 = scmp.ne.s32.totalorder %s1367_s8, %s1071_s30  ;;  %p1079_p0 = scmp.lt.s32.totalorder %s1367_s8, %s1367_s8 }
  0x40   : > { %p1062_p5 = pneg %p1390_p3  ;;  %p1080_p1 = scmp.lt.s32.totalorder %s1071_s30, %s1071_s30 }
  0x42   : > { %p1074_p9 = pnand %p1072_p4, %p1062_p5  ;;  %p1081_p6 = por %p1080_p1, %p1079_p0 }
  0x43   : > { %s1399_s24 = scalar_lea.hbm %s1646_s4, %s878_s14 }
  0x44   : > { %p1075_p11 = pneg %p1074_p9 }
  0x46   : > { %p1082_p8 = pnand %p1081_p6, %p1075_p11 }
  0x48   : > { %1085 = shalt.err (!%p1082_p8)
}
  0x49   : > { %s1210_s1 = smov 128   ;;  %s1211_s2 = smov 8  }
  0x4a   : > { %927 = dma.hbm_to_vmem [thread:$0]  (!%p1390_p3), %s1619_s0, 256, %s1367_s8, [#allocation4], %s1210_s1, %s1210_s1, %s1211_s2  }
  0x4b   : > { %s283_s11 = scalar_lea.vmem [#allocation9], %s861_s26  ;;  %s280_s7 = scalar_lea.sflag [#allocation10], %s1294_s28 }
  0x4c   : > { %s291_s15 = sshll.u32 %s283_s11, 4  ;;  %p1647_p4 = pneg %p1306_p7  ;;  %s292_s15 = int_to_ptr.vmem [resolvable:$true] %s291_s15 }
  0x4d   : > { %s1099_s14 = scalar_lea.vmem %s292_s15, 32  ;;  %s1212_s30 = smov [#allocation9]  }
  0x4e   : > { %p1100_p5 = scmp.ne.s32.totalorder %s292_s15, %s1099_s14  ;;  %s1104_s17 = sshll.u32 %s1212_s30, 4  ;;  %s1105_s17 = int_to_ptr.vmem [resolvable:$false] %s1104_s17 }
  0x4f   : > { %s1106_s4 = scalar_lea.vmem %s1105_s17, 64  ;;  %p1107_p11 = scmp.lt.s32.totalorder %s292_s15, %s1105_s17 }
  0x50   : > { %p1102_p8 = pnand %p1100_p5, %p1647_p4  ;;  %p1108_p0 = scmp.lt.s32.totalorder %s1106_s4, %s1099_s14 }
  0x52   : > { %p1103_p9 = pneg %p1102_p8  ;;  %p1109_p1 = por %p1108_p0, %p1107_p11 }
  0x54   : > { %p1110_p6 = pnand %p1109_p1, %p1103_p9 }
  0x56   : > { %1113 = shalt.err (!%p1110_p6)
}
  0x57   : > { %937 = dma.hbm_to_vmem [thread:$0]  (!%p1306_p7), %s1399_s24, 32, %s292_s15, %s280_s7  }
  0x58   : > { %300 = sbr.rel (%p1363_p2) target bundleno = 357 (0x165), region = 40  ;;  %p1648_p3 = scmp.eq.s32.totalorder (!%p1363_p2), %s1337_s16, 0 }
  0x5d   : > { %1165 = dma.done.wait (%p1648_p3), [#allocation4], 256   ;;  %p1649_p5 = pmov %p1648_p3 }
  0x5e   : > { %s306_s4 = sand.u32 1, %s1337_s16   ;;  %s1428_s28 = sand.u32 1, %s1186_s19  }
  0x5f   : > { %1167 = vsyncadd (%p1649_p5), [#allocation4], 4294967040  ;;  %s866_s8 = sshll.u32 %s1428_s28, 8  ;;  %s307_s10 = scalar_lea.sflag [#allocation7], %s306_s4 }
  0x60   : > { %s1431_s25 = scalar_lea.vmem [#allocation6], %s866_s8 }
  0x61   : > { %1169 = dma.done.wait (%p1346_p10), %s307_s10, 8192  }
  0x62   : > { %1171 = vsyncadd (%p1346_p10), %s307_s10, 4294959104  ;;  %s868_s24 = sshll.u32 %s1428_s28, 1  ;;  %s1438_s12 = scalar_lea.vmem [#allocation8], %s866_s8 }
  0x63   : > { %s325_s26 = scalar_lea.sflag [#allocation10], %s1428_s28  ;;  %s1441_s16 = scalar_lea.vmem [#allocation9], %s868_s24 }
  0x64   : > { %1173 = dma.done.wait (%p1346_p10), %s325_s26, 32  }
  0x65   : > { %1175 = vsyncadd (%p1346_p10), %s325_s26, 4294967264  ;;  %s870_s1 = sshll.u32 %s1194_s21, 1  ;;  %v450_v0 = vlaneseq  ;;  %v1213_v1 = vmov 0.0   ;;  %v447_v5 = vld [vmem:[%s1438_s12 + $0xf8] sm:$0xff]  ;;  %v414_v9 = vld [vmem:[%s1431_s25 + $0xf0] sm:$0xff]  ;;  %s869_s27 = sshll.u32 %s1428_s28, 5 }
  0x66   : > { %p373_p7 = scmp.lt.s32.totalorder %s870_s1, 3  ;;  %666 = vmatprep.mubr.f32.mxu0 %v1213_v1  ;;  %672 = vmatprep.mubr.f32.mxu1 %v1213_v1  ;;  %v415_v7 = vld [vmem:[%s1431_s25 + $0xf8] sm:$0xff]  ;;  %v446_v10 = vld [vmem:[%s1438_s12 + $0xf0] sm:$0xff]  ;;  %v413_v12 = vld [vmem:[%s1431_s25 + $0xe8] sm:$0xff]  ;;  %s368_s11 = scalar_lea.vmem [#allocation11], %s869_s27 }
  0x67   : > { %v1448_v2 = vshrl.u32 %v450_v0, 7  ;;  %v445_v13 = vld [vmem:[%s1438_s12 + $0xe8] sm:$0xff]  ;;  %v444_v14 = vld [vmem:[%s1438_s12 + $0xe0] sm:$0xff]  ;;  %v443_v20 = vld [vmem:[%s1438_s12 + $0xd8] sm:$0xff]  ;;  %s700_s15 = sshll.u32 %s368_s11, 4  ;;  %s879_s7 = sshll.u32 %s1194_s21, 8  ;;  %s1566_s15 = int_to_ptr.vmem [resolvable:$true] %s700_s15 }
  0x68   : > { %s1661_s1 = smov (!%p373_p7, %s870_s1), 3  ;;  %v412_v18 = vld [vmem:[%s1431_s25 + $0xe0] sm:$0xff]  ;;  %v411_v21 = vld [vmem:[%s1431_s25 + $0xd8] sm:$0xff]  ;;  %v442_v23 = vld [vmem:[%s1438_s12 + $0xd0] sm:$0xff]  ;;  %s1571_s17 = scalar_lea.hbm %s1624_s5, %s879_s7 }
  0x69   : > { %v456_v3 = vsub.s32 1, %v1448_v2  ;;  %v452_v4 = vsub.s32 0, %v1448_v2  ;;  %s375_s13 = scalar_lea.vmem %s1622_s3, %s1661_s1  ;;  %v441_v24 = vld [vmem:[%s1438_s12 + $0xc8] sm:$0xff]  ;;  %v410_v28 = vld [vmem:[%s1431_s25 + $0xd0] sm:$0xff]  ;;  %v440_v29 = vld [vmem:[%s1438_s12 + $0xc0] sm:$0xff]  ;;  %s684_s21 = scalar_lea.sflag [#allocation5], %s1428_s28 }
  0x6a   : > { %v448_v6 = vld [vmem:[%s375_s13] sm:$0x3]  ;;  %v409_v32 = vld [vmem:[%s1431_s25 + $0xc8] sm:$0xff]  ;;  %v439_v35 = vld [vmem:[%s1438_s12 + $0xb8] sm:$0xff]  ;;  %s1114_s4 = scalar_lea.vmem %s1566_s15, 512  ;;  %s1214_s8 = smov [#allocation11]  }
  0x6b   : > { %v1459_v8 = vrot.slane %v448_v6, %v456_v3  ;;  %v1465_v11 = vrot.slane %v448_v6, %v452_v4  ;;  %v438_v36 = vld [vmem:[%s1438_s12 + $0xb0] sm:$0xff]  ;;  %v408_v38 = vld [vmem:[%s1431_s25 + $0xc0] sm:$0xff]  ;;  %v437_v40 = vld [vmem:[%s1438_s12 + $0xa8] sm:$0xff]  ;;  %p1115_p10 = scmp.ne.s32.totalorder %s1566_s15, %s1114_s4  ;;  %s1118_s10 = sshll.u32 %s1214_s8, 4  ;;  %s1119_s10 = int_to_ptr.vmem [resolvable:$false] %s1118_s10 }
  0x6c   : > { %v407_v42 = vld [vmem:[%s1431_s25 + $0xb8] sm:$0xff]  ;;  %v436_v44 = vld [vmem:[%s1438_s12 + $0xa0] sm:$0xff]  ;;  %v406_v47 = vld [vmem:[%s1431_s25 + $0xb0] sm:$0xff]  ;;  %p1121_p8 = scmp.lt.s32.totalorder %s1566_s15, %s1119_s10 }
  0x6d   : > { %v491_v15 = vmul.f32 %v1459_v8, %v447_v5  ;;  %v490_v16 = vmul.f32 %v1465_v11, %v446_v10  ;;  %v489_v17 = vmul.f32 %v1459_v8, %v445_v13  ;;  %v488_v19 = vmul.f32 %v1465_v11, %v444_v14  ;;  %v435_v45 = vld [vmem:[%s1438_s12 + $0x98] sm:$0xff]  ;;  %v434_v49 = vld [vmem:[%s1438_s12 + $0x90] sm:$0xff]  ;;  %v405_v51 = vld [vmem:[%s1431_s25 + $0xa8] sm:$0xff]  ;;  %p1116_p2 = pnand %p1115_p10, %p1354_p12 }
  0x6e   : > { %v487_v22 = vmul.f32 %v1459_v8, %v443_v20  ;;  %v486_v31 = vmul.f32 %v1465_v11, %v442_v23  ;;  %v485_v33 = vmul.f32 %v1459_v8, %v441_v24  ;;  %v484_v34 = vmul.f32 %v1465_v11, %v440_v29  ;;  %v433_v53 = vld [vmem:[%s1438_s12 + $0x88] sm:$0xff]  ;;  %v404_v55 = vld [vmem:[%s1431_s25 + $0xa0] sm:$0xff]  ;;  %v403_v59 = vld [vmem:[%s1431_s25 + $0x98] sm:$0xff] }
  0x6f   : > { %v523_v25 = vadd.f32 %v491_v15, %v415_v7  ;;  %v522_v26 = vadd.f32 %v490_v16, %v414_v9  ;;  %v521_v27 = vadd.f32 %v489_v17, %v413_v12  ;;  %v520_v30 = vadd.f32 %v488_v19, %v412_v18  ;;  %v432_v57 = vld [vmem:[%s1438_s12 + $0x80] sm:$0xff]  ;;  %v431_v61 = vld [vmem:[%s1438_s12 + $0x78] sm:$0xff]  ;;  %v402_v63 = vld [vmem:[%s1431_s25 + $0x90] sm:$0xff]  ;;  %p1117_p4 = pneg %p1116_p2 }
  0x70   : > { %v519_v37 = vadd.f32 %v487_v22, %v411_v21  ;;  %v483_v39 = vmul.f32 %v1459_v8, %v439_v35  ;;  %v518_v41 = vadd.f32 %v486_v31, %v410_v28  ;;  %v482_v43 = vmul.f32 %v1465_v11, %v438_v36  ;;  %v430_v1 = vld [vmem:[%s1438_s12 + $0x70] sm:$0xff]  ;;  %v401_v6 = vld [vmem:[%s1431_s25 + $0x88] sm:$0xff]  ;;  %v400_v12 = vld [vmem:[%s1431_s25 + $0x80] sm:$0xff] }
  0x71   : > { %602 = vmatprep.subr.mxu0 %v523_v25  ;;  %880 = vmatprep.subr.mxu1 %v523_v25  ;;  %v517_v46 = vadd.f32 %v485_v33, %v409_v32  ;;  %v481_v48 = vmul.f32 %v1459_v8, %v437_v40  ;;  %v516_v50 = vadd.f32 %v484_v34, %v408_v38  ;;  %v429_v9 = vld [vmem:[%s1438_s12 + $0x68] sm:$0xff]  ;;  %v428_v14 = vld [vmem:[%s1438_s12 + $0x60] sm:$0xff]  ;;  %v399_v16 = vld [vmem:[%s1431_s25 + $0x78] sm:$0xff] }
  0x72   : > { %603 = vmatpush1.msra.mxu0 %v522_v26  ;;  %896 = vmatpush1.msra.mxu1 %v522_v26  ;;  %v480_v52 = vmul.f32 %v1465_v11, %v436_v44  ;;  %v515_v54 = vadd.f32 %v483_v39, %v407_v42  ;;  %v479_v56 = vmul.f32 %v1459_v8, %v435_v45  ;;  %v427_v18 = vld [vmem:[%s1438_s12 + $0x58] sm:$0xff]  ;;  %v398_v20 = vld [vmem:[%s1431_s25 + $0x70] sm:$0xff]  ;;  %v397_v24 = vld [vmem:[%s1431_s25 + $0x68] sm:$0xff] }
  0x73   : > { %604 = vmatprep.subr.mxu0 %v521_v27  ;;  %881 = vmatprep.subr.mxu1 %v521_v27  ;;  %v514_v58 = vadd.f32 %v482_v43, %v406_v47  ;;  %v478_v60 = vmul.f32 %v1465_v11, %v434_v49  ;;  %v513_v62 = vadd.f32 %v481_v48, %v405_v51  ;;  %v426_v22 = vld [vmem:[%s1438_s12 + $0x50] sm:$0xff]  ;;  %v425_v26 = vld [vmem:[%s1438_s12 + $0x48] sm:$0xff]  ;;  %v396_v28 = vld [vmem:[%s1431_s25 + $0x60] sm:$0xff] }
  0x74   : > { %605 = vmatpush1.msra.mxu0 %v520_v30  ;;  %897 = vmatpush1.msra.mxu1 %v520_v30  ;;  %v477_v0 = vmul.f32 %v1459_v8, %v433_v53  ;;  %v512_v5 = vadd.f32 %v480_v52, %v404_v55  ;;  %v476_v7 = vmul.f32 %v1465_v11, %v432_v57  ;;  %v424_v30 = vld [vmem:[%s1438_s12 + $0x40] sm:$0xff]  ;;  %v395_v32 = vld [vmem:[%s1431_s25 + $0x58] sm:$0xff]  ;;  %v394_v36 = vld [vmem:[%s1431_s25 + $0x50] sm:$0xff] }
  0x75   : > { %606 = vmatprep.subr.mxu0 %v519_v37  ;;  %882 = vmatprep.subr.mxu1 %v519_v37  ;;  %v511_v10 = vadd.f32 %v479_v56, %v403_v59  ;;  %v475_v13 = vmul.f32 %v1459_v8, %v431_v61  ;;  %v510_v15 = vadd.f32 %v478_v60, %v402_v63  ;;  %v423_v34 = vld [vmem:[%s1438_s12 + $0x38] sm:$0xff]  ;;  %v422_v38 = vld [vmem:[%s1438_s12 + $0x30] sm:$0xff]  ;;  %v393_v40 = vld [vmem:[%s1431_s25 + $0x48] sm:$0xff] }
  0x76   : > { %607 = vmatpush1.msra.mxu0 %v518_v41  ;;  %898 = vmatpush1.msra.mxu1 %v518_v41  ;;  %v474_v17 = vmul.f32 %v1465_v11, %v430_v1  ;;  %v509_v19 = vadd.f32 %v477_v0, %v401_v6  ;;  %v473_v21 = vmul.f32 %v1459_v8, %v429_v9  ;;  %v421_v42 = vld [vmem:[%s1438_s12 + $0x28] sm:$0xff]  ;;  %v392_v44 = vld [vmem:[%s1431_s25 + $0x40] sm:$0xff]  ;;  %v391_v48 = vld [vmem:[%s1431_s25 + $0x38] sm:$0xff] }
  0x77   : > { %608 = vmatprep.subr.mxu0 %v517_v46  ;;  %883 = vmatprep.subr.mxu1 %v517_v46  ;;  %v508_v23 = vadd.f32 %v476_v7, %v400_v12  ;;  %v472_v25 = vmul.f32 %v1465_v11, %v428_v14  ;;  %v507_v27 = vadd.f32 %v475_v13, %v399_v16  ;;  %v420_v46 = vld [vmem:[%s1438_s12 + $0x20] sm:$0xff]  ;;  %v390_v52 = vld [vmem:[%s1431_s25 + $0x30] sm:$0xff]  ;;  %v389_v56 = vld [vmem:[%s1431_s25 + $0x28] sm:$0xff] }
  0x78   : > { %609 = vmatpush1.msra.mxu0 %v516_v50  ;;  %899 = vmatpush1.msra.mxu1 %v516_v50  ;;  %v471_v29 = vmul.f32 %v1459_v8, %v427_v18  ;;  %v506_v31 = vadd.f32 %v474_v17, %v398_v20  ;;  %v470_v33 = vmul.f32 %v1465_v11, %v426_v22  ;;  %v419_v50 = vld [vmem:[%s1438_s12 + $0x18] sm:$0xff]  ;;  %v388_v60 = vld [vmem:[%s1431_s25 + $0x20] sm:$0xff]  ;;  %v386_v6 = vld [vmem:[%s1431_s25 + $0x10] sm:$0xff] }
  0x79   : > { %610 = vmatprep.subr.mxu0 %v515_v54  ;;  %884 = vmatprep.subr.mxu1 %v515_v54  ;;  %v505_v35 = vadd.f32 %v473_v21, %v397_v24  ;;  %v469_v37 = vmul.f32 %v1459_v8, %v425_v26  ;;  %v504_v39 = vadd.f32 %v472_v25, %v396_v28  ;;  %v418_v54 = vld [vmem:[%s1438_s12 + $0x10] sm:$0xff]  ;;  %v387_v0 = vld [vmem:[%s1431_s25 + $0x18] sm:$0xff]  ;;  %v384_v14 = vld [vmem:[%s1431_s25] sm:$0xff] }
  0x7a   : > { %611 = vmatpush1.msra.mxu0 %v514_v58  ;;  %900 = vmatpush1.msra.mxu1 %v514_v58  ;;  %v468_v41 = vmul.f32 %v1465_v11, %v424_v30  ;;  %v503_v43 = vadd.f32 %v471_v29, %v395_v32  ;;  %v467_v45 = vmul.f32 %v1459_v8, %v423_v34  ;;  %v417_v58 = vld [vmem:[%s1438_s12 + $0x8] sm:$0xff]  ;;  %v557_v17 = vld [vmem:[#allocation3 + $0x8] sm:$0xff]  ;;  %v590_v18 = vld [vmem:[%s1441_s16] sm:$0x3] }
  0x7b   : > { %612 = vmatprep.subr.mxu0 %v513_v62  ;;  %885 = vmatprep.subr.mxu1 %v513_v62  ;;  %v502_v47 = vadd.f32 %v470_v33, %v394_v36  ;;  %v466_v49 = vmul.f32 %v1465_v11, %v422_v38  ;;  %v501_v51 = vadd.f32 %v469_v37, %v393_v40  ;;  %v416_v62 = vld [vmem:[%s1438_s12] sm:$0xff] }
  0x7c   : > { %613 = vmatpush1.msra.mxu0 %v512_v5  ;;  %901 = vmatpush1.msra.mxu1 %v512_v5  ;;  %v465_v53 = vmul.f32 %v1459_v8, %v421_v42  ;;  %v500_v55 = vadd.f32 %v468_v41, %v392_v44  ;;  %v464_v57 = vmul.f32 %v1465_v11, %v420_v46 }
  0x7d   : > { %614 = vmatprep.subr.mxu0 %v511_v10  ;;  %886 = vmatprep.subr.mxu1 %v511_v10  ;;  %v499_v59 = vadd.f32 %v467_v45, %v391_v48  ;;  %v463_v61 = vmul.f32 %v1459_v8, %v419_v50  ;;  %v498_v63 = vadd.f32 %v466_v49, %v390_v52  ;;  %v385_v10 = vld [vmem:[%s1431_s25 + $0x8] sm:$0xff]  ;;  %s1120_s25 = scalar_lea.vmem %s1119_s10, 1024 }
  0x7e   : > { %615 = vmatpush1.msra.mxu0 %v510_v15  ;;  %902 = vmatpush1.msra.mxu1 %v510_v15  ;;  %v462_v1 = vmul.f32 %v1465_v11, %v418_v54  ;;  %v497_v5 = vadd.f32 %v465_v53, %v389_v56  ;;  %v461_v7 = vmul.f32 %v1459_v8, %v417_v58  ;;  %p1122_p9 = scmp.lt.s32.totalorder %s1120_s25, %s1114_s4 }
  0x7f   : > { %616 = vmatprep.subr.mxu0 %v509_v19  ;;  %887 = vmatprep.subr.mxu1 %v509_v19  ;;  %v496_v9 = vadd.f32 %v464_v57, %v388_v60  ;;  %v460_v12 = vmul.f32 %v1465_v11, %v416_v62  ;;  %v495_v13 = vadd.f32 %v463_v61, %v387_v0  ;;  %v556_v11 = vld [vmem:[#allocation3] sm:$0xff] }
  0x80   : > { %617 = vmatpush1.msra.mxu0 %v508_v23  ;;  %903 = vmatpush1.msra.mxu1 %v508_v23  ;;  %v494_v15 = vadd.f32 %v462_v1, %v386_v6  ;;  %v493_v16 = vadd.f32 %v461_v7, %v385_v10  ;;  %v595_v19 = vrot.slane %v590_v18, %v452_v4  ;;  %p1123_p11 = por %p1122_p9, %p1121_p8 }
  0x81   : > { %618 = vmatprep.subr.mxu0 %v507_v27  ;;  %888 = vmatprep.subr.mxu1 %v507_v27  ;;  %v492_v8 = vadd.f32 %v460_v12, %v384_v14  ;;  %v599_v20 = vrot.slane %v590_v18, %v456_v3 }
  0x82   : > { %619 = vmatpush1.msra.mxu0 %v506_v31  ;;  %904 = vmatpush1.msra.mxu1 %v506_v31  ;;  %p1124_p0 = pnand %p1123_p11, %p1117_p4 }
  0x83   : > { %620 = vmatprep.subr.mxu0 %v505_v35  ;;  %889 = vmatprep.subr.mxu1 %v505_v35 }
  0x84   : > { %621 = vmatpush1.msra.mxu0 %v504_v39  ;;  %905 = vmatpush1.msra.mxu1 %v504_v39 }
  0x85   : > { %622 = vmatprep.subr.mxu0 %v503_v43  ;;  %890 = vmatprep.subr.mxu1 %v503_v43 }
  0x86   : > { %623 = vmatpush1.msra.mxu0 %v502_v47  ;;  %906 = vmatpush1.msra.mxu1 %v502_v47 }
  0x87   : > { %624 = vmatprep.subr.mxu0 %v501_v51  ;;  %891 = vmatprep.subr.mxu1 %v501_v51 }
  0x88   : > { %625 = vmatpush1.msra.mxu0 %v500_v55  ;;  %907 = vmatpush1.msra.mxu1 %v500_v55 }
  0x89   : > { %626 = vmatprep.subr.mxu0 %v499_v59  ;;  %892 = vmatprep.subr.mxu1 %v499_v59 }
  0x8a   : > { %627 = vmatpush1.msra.mxu0 %v498_v63  ;;  %908 = vmatpush1.msra.mxu1 %v498_v63 }
  0x8b   : > { %628 = vmatprep.subr.mxu0 %v497_v5  ;;  %893 = vmatprep.subr.mxu1 %v497_v5 }
  0x8c   : > { %629 = vmatpush1.msra.mxu0 %v496_v9  ;;  %909 = vmatpush1.msra.mxu1 %v496_v9 }
  0x8d   : > { %630 = vmatprep.subr.mxu0 %v495_v13  ;;  %894 = vmatprep.subr.mxu1 %v495_v13 }
  0x8e   : > { %631 = vmatpush1.msra.mxu0 %v494_v15  ;;  %910 = vmatpush1.msra.mxu1 %v494_v15 }
  0x8f   : > { %632 = vmatprep.subr.mxu0 %v493_v16  ;;  %895 = vmatprep.subr.mxu1 %v493_v16 }
  0x90   : > { %633 = vmatpush1.msra.mxu0 %v492_v8  ;;  %911 = vmatpush1.msra.mxu1 %v492_v8 }
  0x91   : > { %667 = vmatmul.mubr.f32.vlgmr.msra.gmra.mxu0 %v556_v11  ;;  %673 = vmatmul.mubr.f32.vlgmr.msra.gmra.mxu1 %v557_v17 }
 0x151   : > { %v668_v21 = vpop.f32.mrf.mxu0  ;;  %v674_v22 = vpop.f32.mrf.mxu1 }
 0x152   : > { %v669_v23 = vadd.f32 %v668_v21, %v595_v19  ;;  %v675_v24 = vadd.f32 %v674_v22, %v595_v19 }
 0x153   : > { %v670_v25 = vpop.f32.mrf.mxu0  ;;  %v676_v26 = vpop.f32.mrf.mxu1 }
 0x154   : > { %679 = vst [vmem:[%s368_s11] sm:$0xff] %v669_v23  ;;  %681 = vst [vmem:[%s368_s11 + $0x10] sm:$0xff] %v675_v24  ;;  %v671_v2 = vadd.f32 %v670_v25, %v599_v20  ;;  %v677_v3 = vadd.f32 %v676_v26, %v599_v20 }
 0x156   : > { %680 = vst [vmem:[%s368_s11 + $0x8] sm:$0xff] %v671_v2  ;;  %682 = vst [vmem:[%s368_s11 + $0x18] sm:$0xff] %v677_v3 }
 0x157   : > { %1127 = shalt.err (!%p1124_p0)
}
 0x158   : > { %s1128_s24 = scalar_lea.hbm %s1571_s17, 512  ;;  %s1132_s16 = scalar_lea.hbm %s1624_s5, 1024 }
 0x159   : > { %p1129_p1 = scmp.ne.s32.totalorder %s1571_s17, %s1128_s24  ;;  %p1133_p5 = scmp.lt.s32.totalorder %s1571_s17, %s1624_s5 }
 0x15a   : > { %p1134_p7 = scmp.lt.s32.totalorder %s1132_s16, %s1128_s24 }
 0x15b   : > { %p1130_p6 = pnand %p1129_p1, %p1354_p12 }
 0x15c   : > { %p1135_p10 = por %p1134_p7, %p1133_p5 }
 0x15d   : > { %p1131_p3 = pneg %p1130_p6 }
 0x15f   : > { %p1136_p2 = pnand %p1135_p10, %p1131_p3 }
 0x161   : > { %1139 = shalt.err (!%p1136_p2)
}
 0x162   : > { %s1215_s2 = smov 256   ;;  %s1216_s13 = smov 512  }
 0x163   : > { %s1217_s27 = smov 16  }
 0x164   : > { %922 = dma.vmem_to_hbm [thread:$0]  (%p1354_p12), %s1566_s15, 512, %s1571_s17, %s684_s21, %s1215_s2, %s1216_s13, %s1217_s27  }
 0x165 PF: > { %s715_s11 = sand.u32 1, %s1182_s18   ;;  %p1650_p4 = scmp.ge.s32.totalorder %s1202_s23, 2 }
 0x166   : > { %s716_s7 = scalar_lea.sflag [#allocation5], %s715_s11 }
 0x167   : > { %p939_p8 = pnand %p1650_p4, %p1358_p13 }
 0x169   : > { %p940_p9 = pneg %p939_p8 }
 0x16b   : > { %1177 = dma.done.wait (%p940_p9), %s716_s7, 512  }
 0x16c   : > { %1179 = vsyncadd (%p940_p9), %s716_s7, 4294966784  ;;  %s25_s23 = sadd.s32 1, %s1202_s23   ;;  %s1651_s6 = sld [smem:[#allocation17_spill]] }
 0x16d   : > { %p22_p11 = scmp.ge.s32.totalorder %s25_s23, 4   ;;  %s1652_s28 = sld [smem:[#allocation16_spill]] }
 0x16e   : > { %s1653_s18 = smov %s1186_s19  ;;  %s1654_s19 = smov %s1190_s20 }
 0x16f   : > { %s1656_s21 = smov %s1198_s22  ;;  %24 = sbr.rel (!%p22_p11) target bundleno = 13 (0xd), region = 122 }
 0x172   : > { %s1655_s20 = smov %s1651_s6 }
 0x173   : > { %s1657_s22 = smov %s1652_s28 }
 0x174   :  { %721 = vsyncpa [#allocation4], 1 }
 0x175   :  { %723 = vsyncpa [#allocation4 + $0x1], 1 }
 0x176   :  { %724 = vsyncpa [#allocation7], 1 }
 0x177   :  { %726 = vsyncpa [#allocation7 + $0x1], 1 }
 0x178   :  { %727 = vsyncpa [#allocation10], 1 }
 0x179   :  { %729 = vsyncpa [#allocation10 + $0x1], 1 }
 0x17a   :  { %730 = vsyncpa [#allocation5], 1 }
 0x17b   :  { %732 = vsyncpa [#allocation5 + $0x1], 1 }

</bundles_post_ra>
